<compile_context>
chip_gen: v7x
topology: tpu7x:2x2x1
jax: 0.10.0
libtpu: 0.0.40
codegen_flags: <defaults>
</compile_context>

<pallas_src>
import functools

import jax
import jax.numpy as jnp
from jax import lax
from jax.experimental import pallas as pl
from jax.experimental.pallas import tpu as pltpu

_LANES = 128
_TARGET_STEP_BYTES = 8 << 20     # ~4 MiB of real HBM data per input per step
_INPUT_VMEM_BUDGET = 20 << 20    # 2 inputs x 2 pipeline buffers of (padded) tiles


def _tensorcores_per_chip() -> int:
    """2-way grid split only on chips with 2 TensorCores (v7x); else 1."""
    try:
        kind = jax.devices()[0].device_kind.lower()
    except Exception:
        return 1
    return 2 if "v7" in kind else 1


def _masked_mse_kernel(x_ref, y_ref, out_ref, acc_ref, *, n_valid, tile_n,
                       tiles_per_core):
    p = pl.program_id(0)
    t = pl.program_id(1)

    @pl.when(t == 0)
    def _():
        acc_ref[...] = jnp.zeros_like(acc_ref)

    x = x_ref[...].astype(jnp.float32)          # (B, tile_n), cast in-register
    y = y_ref[...].astype(jnp.float32)
    d = x - y
    sq = d * d

    col0 = (p * tiles_per_core + t) * tile_n
    is_tail = col0 + tile_n > n_valid

    # Hot path: pure VALU lane-axis reduction into the tiny per-sample acc.
    @pl.when(jnp.logical_not(is_tail))
    def _():
        acc_ref[...] += jnp.sum(sq, axis=1, keepdims=True)

    # Cold path: only the final (partial / out-of-range) tile pays for the
    # iota validity mask; out-of-bounds garbage is select-ed away, not summed.
    @pl.when(is_tail)
    def _():
        col = col0 + lax.broadcasted_iota(jnp.int32, sq.shape, 1)
        acc_ref[...] += jnp.sum(jnp.where(col < n_valid, sq, 0.0),
                                axis=1, keepdims=True)

    @pl.when(t == pl.num_programs(1) - 1)
    def _():
        out_ref[...] = acc_ref[...].reshape(out_ref.shape)


def masked_mse_loss(inp, tgt, mask=None, *, _force_tile_n=None):
    """MaskedLoss(F.mse_loss, reduction='mean', starting_dim_to_collapse=1).forward"""
    assert inp.shape == tgt.shape
    B = int(inp.shape[0])
    N = 1
    for s in inp.shape[1:]:
        N *= int(s)

    if mask is None:
        # reduction='mean' over all elements == uniform per-sample masking.
        mask = jnp.ones((B,), dtype=jnp.float32)
    mask = mask.reshape(B).astype(jnp.float32)

    x = inp.reshape(B, N)          # free reshapes; no padding copies
    y = tgt.reshape(B, N)

    itemsize = jnp.dtype(inp.dtype).itemsize
    b_pad = -(-B // 8) * 8         # sublane-padded rows of a VMEM tile

    if _force_tile_n is not None:
        tile_n = int(_force_tile_n)
    else:
        target_tile_n = max(_TARGET_STEP_BYTES // (2 * B * itemsize), _LANES)
        budget_tile_n = max(_INPUT_VMEM_BUDGET // (4 * b_pad * itemsize), _LANES)
        tile_n = min(target_tile_n, budget_tile_n)
        tile_n = max((tile_n // _LANES) * _LANES, _LANES)
        # TODO(synk): very large batch sizes would additionally need tiling
        # along B; this sizing assumes B*128*itemsize per step fits in VMEM.
    if N <= tile_n:
        tile_n = N                 # one full-row tile: exact dims, no tail work
    num_tiles = -(-N // tile_n)

    ncores = max(1, min(_tensorcores_per_chip(), num_tiles))
    tiles_per_core = -(-num_tiles // ncores)

    kernel = functools.partial(_masked_mse_kernel, n_valid=N, tile_n=tile_n,
                               tiles_per_core=tiles_per_core)

    in_spec = pl.BlockSpec((B, tile_n),
                           lambda p, t: (0, p * tiles_per_core + t))

    # ~2x of (2 inputs x 2 pipeline buffers), floored/capped so it is
    # load-bearing on v5e (16 MiB scoped default) and safe on v7x (64 MiB).
    buf_bytes = 4 * b_pad * tile_n * itemsize
    vmem_limit = int(min(max(2 * buf_bytes, 16 << 20), 48 << 20))

    partials = pl.pallas_call(
        kernel,
        out_shape=jax.ShapeDtypeStruct((ncores, B, 1), jnp.float32),
        grid_spec=pltpu.PrefetchScalarGridSpec(
            num_scalar_prefetch=0,
            grid=(ncores, tiles_per_core),
            in_specs=[in_spec, in_spec],
            out_specs=pl.BlockSpec((1, B, 1), lambda p, t: (p, 0, 0)),
            scratch_shapes=[pltpu.VMEM((B, 1), jnp.float32)],
        ),
        compiler_params=pltpu.CompilerParams(
            dimension_semantics=("parallel", "arbitrary"),
            vmem_limit_bytes=vmem_limit,
        ),
    )(x, y)

    per_sample_sq = jnp.sum(partials[:, :, 0], axis=0)       # (B,)
    # Fold 1/N (per-sample mean) and 1/sum(mask) into a tiny host-side dot.
    # TODO(synk): PyTorch returns None (with a warning) when mask.sum() == 0
    # and filters NaN rows; that data-dependent early exit has no kernel
    # equivalent -- an all-zero mask here yields inf/nan.
    w = mask / (jnp.sum(mask) * jnp.float32(N))
    return jnp.sum(per_sample_sq * w)


def _reference(inp, tgt, mask):
    B = inp.shape[0]
    per_sample = jnp.mean(
        (inp.astype(jnp.float32) - tgt.astype(jnp.float32)) ** 2,
        axis=tuple(range(1, inp.ndim)))
    mask = mask.reshape(B).astype(jnp.float32)
    return jnp.sum(per_sample * mask) / jnp.sum(mask)


if __name__ == "__main__":
    key = jax.random.PRNGKey(0)
    k1, k2, k3, k4, k5, k6, k7 = jax.random.split(key, 7)

    # Small NCHW shape consistent with the module's forward.
    B, C, H, W = 2, 4, 16, 16
    inp = jax.random.normal(k1, (B, C, H, W), dtype=jnp.float32)
    tgt = jax.random.normal(k2, (B, C, H, W), dtype=jnp.float32)
    mask = (jax.random.uniform(k3, (B,)) > 0.3).astype(jnp.float32)
    mask = mask.at[0].set(1.0)                      # guarantee non-zero sum
    out = jax.block_until_ready(masked_mse_loss(inp, tgt, mask))
    ref = _reference(inp, tgt, mask)
    assert jnp.allclose(out, ref, rtol=1e-5, atol=1e-5), (out, ref)

    # N not a multiple of 128 (single full-row tile, no host padding).
    B2, C2, H2, W2 = 2, 3, 20, 20
    inp2 = jax.random.normal(k4, (B2, C2, H2, W2), dtype=jnp.float32)
    tgt2 = jax.random.normal(k5, (B2, C2, H2, W2), dtype=jnp.float32)
    mask2 = jnp.array([1.0, 1.0], dtype=jnp.float32)
    out2 = jax.block_until_ready(masked_mse_loss(inp2, tgt2, mask2))
    ref2 = _reference(inp2, tgt2, mask2)
    assert jnp.allclose(out2, ref2, rtol=1e-5, atol=1e-5), (out2, ref2)

    # Multi-tile path with an in-kernel masked tail (forced small tile size).
    B3, C3, H3, W3 = 2, 3, 37, 37
    inp3 = jax.random.normal(k6, (B3, C3, H3, W3), dtype=jnp.float32)
    tgt3 = jax.random.normal(k7, (B3, C3, H3, W3), dtype=jnp.float32)
    mask3 = jnp.array([1.0, 0.0], dtype=jnp.float32)
    out3 = jax.block_until_ready(
        masked_mse_loss(inp3, tgt3, mask3, _force_tile_n=512))
    ref3 = _reference(inp3, tgt3, mask3)
    assert jnp.allclose(out3, ref3, rtol=1e-5, atol=1e-5), (out3, ref3)

    print("KERNEL_OK")
</pallas_src>

<mosaic_0001>
module attributes {stable_mosaic.version = 11 : i64} {
  func.func @_masked_mse_kernel(%arg0: i32, %arg1: i32, %arg2: memref<2x1024xf32, #tpu.memory_space<vmem>>, %arg3: memref<2x1024xf32, #tpu.memory_space<vmem>>, %arg4: memref<1x2x1xf32, #tpu.memory_space<vmem>>, %arg5: memref<2x1xf32, #tpu.memory_space<vmem>>) attributes {dimension_semantics = [#tpu.dimension_semantics<parallel>, #tpu.dimension_semantics<arbitrary>], iteration_bounds = array<i64: 1, 1>, scalar_prefetch = 0 : i64, scratch_operands = 1 : i64, tpu.core_type = #tpu.core_type<tc>, window_params = [{transform_indices = @transform_0, window_bounds = array<i64: 2, 1024>}, {transform_indices = @transform_1, window_bounds = array<i64: 2, 1024>}, {transform_indices = @transform_2, window_bounds = array<i64: 1, 2, 1>}]} {
    %c0_i32 = arith.constant 0 : i32
    %0 = arith.cmpi eq, %arg1, %c0_i32 : i32
    %1 = arith.extui %0 : i1 to i32
    %c0_i32_0 = arith.constant 0 : i32
    %2 = arith.cmpi ne, %1, %c0_i32_0 : i32
    scf.if %2 {
      %cst = arith.constant 0.000000e+00 : f32
      %20 = vector.broadcast %cst : f32 to vector<2x1xf32>
      %c0_10 = arith.constant 0 : index
      %c0_11 = arith.constant 0 : index
      %21 = vector.load %arg5[%c0_10, %c0_11] : memref<2x1xf32, #tpu.memory_space<vmem>>, vector<2x1xf32>
      tpu.vector_store %arg5[%c0_10, %c0_11], %20 {strides = array<i32>} : memref<2x1xf32, #tpu.memory_space<vmem>>, vector<2x1xf32>,
    } else {
    }
    %c0 = arith.constant 0 : index
    %c0_1 = arith.constant 0 : index
    %3 = vector.load %arg2[%c0, %c0_1] : memref<2x1024xf32, #tpu.memory_space<vmem>>, vector<2x1024xf32>
    %c0_2 = arith.constant 0 : index
    %c0_3 = arith.constant 0 : index
    %4 = vector.load %arg3[%c0_2, %c0_3] : memref<2x1024xf32, #tpu.memory_space<vmem>>, vector<2x1024xf32>
    %5 = arith.subf %3, %4 : vector<2x1024xf32>
    %6 = arith.mulf %5, %5 : vector<2x1024xf32>
    %c1_i32 = arith.constant 1 : i32
    %7 = arith.muli %arg0, %c1_i32 : i32
    %8 = arith.addi %7, %arg1 : i32
    %c1024_i32 = arith.constant 1024 : i32
    %9 = arith.muli %8, %c1024_i32 : i32
    %c1024_i32_4 = arith.constant 1024 : i32
    %10 = arith.addi %9, %c1024_i32_4 : i32
    %c1024_i32_5 = arith.constant 1024 : i32
    %11 = arith.cmpi sgt, %10, %c1024_i32_5 : i32
    %true = arith.constant true
    %12 = arith.xori %11, %true : i1
    %13 = arith.extui %12 : i1 to i32
    %c0_i32_6 = arith.constant 0 : i32
    %14 = arith.cmpi ne, %13, %c0_i32_6 : i32
    scf.if %14 {
      %c0_10 = arith.constant 0 : index
      %c0_11 = arith.constant 0 : index
      %20 = vector.load %arg5[%c0_10, %c0_11] : memref<2x1xf32, #tpu.memory_space<vmem>>, vector<2x1xf32>
      %cst = arith.constant dense<0.000000e+00> : vector<2xf32>
      %21 = vector.multi_reduction <add>, %6, %cst [1] : vector<2x1024xf32> to vector<2xf32>
      %22 = vector.shape_cast %21 : vector<2xf32> to vector<2x1xf32>
      %23 = arith.addf %20, %22 : vector<2x1xf32>
      %c0_12 = arith.constant 0 : index
      %c0_13 = arith.constant 0 : index
      %24 = vector.load %arg5[%c0_12, %c0_13] : memref<2x1xf32, #tpu.memory_space<vmem>>, vector<2x1xf32>
      tpu.vector_store %arg5[%c0_12, %c0_13], %23 {strides = array<i32>} : memref<2x1xf32, #tpu.memory_space<vmem>>, vector<2x1xf32>,
    } else {
    }
    %15 = arith.extui %11 : i1 to i32
    %c0_i32_7 = arith.constant 0 : i32
    %16 = arith.cmpi ne, %15, %c0_i32_7 : i32
    scf.if %16 {
      %20 = tpu.iota {dimensions = array<i32: 1>} : vector<2x1024xi32>
      %21 = vector.broadcast %9 : i32 to vector<2x1024xi32>
      %22 = arith.addi %21, %20 : vector<2x1024xi32>
      %c0_10 = arith.constant 0 : index
      %c0_11 = arith.constant 0 : index
      %23 = vector.load %arg5[%c0_10, %c0_11] : memref<2x1xf32, #tpu.memory_space<vmem>>, vector<2x1xf32>
      %c1024_i32_12 = arith.constant 1024 : i32
      %24 = vector.broadcast %c1024_i32_12 : i32 to vector<2x1024xi32>
      %25 = arith.cmpi slt, %22, %24 : vector<2x1024xi32>
      %cst = arith.constant 0.000000e+00 : f32
      %26 = vector.broadcast %cst : f32 to vector<2x1024xf32>
      %27 = arith.select %25, %6, %26 : vector<2x1024xi1>, vector<2x1024xf32>
      %cst_13 = arith.constant dense<0.000000e+00> : vector<2xf32>
      %28 = vector.multi_reduction <add>, %27, %cst_13 [1] : vector<2x1024xf32> to vector<2xf32>
      %29 = vector.shape_cast %28 : vector<2xf32> to vector<2x1xf32>
      %30 = arith.addf %23, %29 : vector<2x1xf32>
      %c0_14 = arith.constant 0 : index
      %c0_15 = arith.constant 0 : index
      %31 = vector.load %arg5[%c0_14, %c0_15] : memref<2x1xf32, #tpu.memory_space<vmem>>, vector<2x1xf32>
      tpu.vector_store %arg5[%c0_14, %c0_15], %30 {strides = array<i32>} : memref<2x1xf32, #tpu.memory_space<vmem>>, vector<2x1xf32>,
    } else {
    }
    %c0_i32_8 = arith.constant 0 : i32
    %17 = arith.cmpi eq, %arg1, %c0_i32_8 : i32
    %18 = arith.extui %17 : i1 to i32
    %c0_i32_9 = arith.constant 0 : i32
    %19 = arith.cmpi ne, %18, %c0_i32_9 : i32
    scf.if %19 {
      %c0_10 = arith.constant 0 : index
      %c0_11 = arith.constant 0 : index
      %20 = vector.load %arg5[%c0_10, %c0_11] : memref<2x1xf32, #tpu.memory_space<vmem>>, vector<2x1xf32>
      %21 = vector.shape_cast %20 : vector<2x1xf32> to vector<1x2x1xf32>
      %c0_12 = arith.constant 0 : index
      %c0_13 = arith.constant 0 : index
      %c0_14 = arith.constant 0 : index
      %22 = vector.load %arg4[%c0_12, %c0_13, %c0_14] : memref<1x2x1xf32, #tpu.memory_space<vmem>>, vector<1x2x1xf32>
      tpu.vector_store %arg4[%c0_12, %c0_13, %c0_14], %21 {strides = array<i32>} : memref<1x2x1xf32, #tpu.memory_space<vmem>>, vector<1x2x1xf32>,
    } else {
    }
    return
  }
  func.func @transform_0(%arg0: i32, %arg1: i32) -> (i32, i32) {
    %c1_i32 = arith.constant 1 : i32
    %0 = arith.muli %arg0, %c1_i32 : i32
    %1 = arith.addi %0, %arg1 : i32
    %c0_i32 = arith.constant 0 : i32
    %c0_i32_0 = arith.constant 0 : i32
    return %c0_i32, %1 : i32, i32
  }
  func.func @transform_1(%arg0: i32, %arg1: i32) -> (i32, i32) {
    %c1_i32 = arith.constant 1 : i32
    %0 = arith.muli %arg0, %c1_i32 : i32
    %1 = arith.addi %0, %arg1 : i32
    %c0_i32 = arith.constant 0 : i32
    %c0_i32_0 = arith.constant 0 : i32
    return %c0_i32, %1 : i32, i32
  }
  func.func @transform_2(%arg0: i32, %arg1: i32) -> (i32, i32, i32) {
    %c0_i32 = arith.constant 0 : i32
    %c0_i32_0 = arith.constant 0 : i32
    %c0_i32_1 = arith.constant 0 : i32
    return %arg0, %c0_i32, %c0_i32_0 : i32, i32, i32
  }
}

</mosaic_0001>

<bundles_post_ra>
// kernel: tpu_custom_call.1
= control target key start
LH: loop header
LB: loop body
LE: loop exit
PB: predicated region body
PF: predicated region fallthrough
CT: control target
= control target key end

     0   :  { %7 = vsyncpa [#allocation4], 0  ;;  %s359_s0 = inlined_call_operand.hbm [shape: f32[2,1024], index: 0, kind: input, shape index: {}]   ;;  %s360_s1 = inlined_call_operand.hbm [shape: f32[2,1024], index: 1, kind: input, shape index: {}]   ;;  %s361_s2 = inlined_call_operand.vmem [shape: f32[1,2,1], index: 2, kind: output, shape index: {}]  }
   0x1   :  { %8 = vsyncpa [#allocation6], 0  ;;  %s302_s9 = smov [#allocation3]   ;;  %s303_s11 = smov [#allocation5]  }
   0x2   :  { %s19_s10 = sshll.u32 %s302_s9, 4  ;;  %s33_s12 = sshll.u32 %s303_s11, 4  ;;  %s20_s10 = int_to_ptr.vmem [resolvable:$true] %s19_s10  ;;  %s34_s12 = int_to_ptr.vmem [resolvable:$true] %s33_s12 }
   0x3   :  { %s254_s15 = scalar_lea.hbm %s359_s0, 256 }
   0x4   :  { %p255_p0 = scmp.ne.s32.totalorder %s359_s0, %s254_s15  ;;  %p258_p1 = scmp.lt.u32.totalorder %s254_s15, %s359_s0 }
   0x6   :  { %p260_p2 = pnand %p258_p1, %p255_p0 }
   0x8   :  { %263 = shalt.err (!%p260_p2)
}
   0x9   :  { %s264_s20 = scalar_lea.vmem %s20_s10, 256  ;;  %p269_p4 = scmp.lt.s32.totalorder %s20_s10, %s20_s10 }
   0xa   :  { %p265_p3 = scmp.ne.s32.totalorder %s20_s10, %s264_s20  ;;  %p270_p5 = scmp.lt.s32.totalorder %s264_s20, %s264_s20 }
   0xc   :  { %p271_p6 = por %p270_p5, %p269_p4 }
   0xe   :  { %p272_p7 = pnand %p271_p6, %p265_p3 }
  0x10   :  { %275 = shalt.err (!%p272_p7)
}
  0x11   :  { %22 = dma.hbm_to_vmem [thread:$0]  %s359_s0, 256, %s20_s10, [#allocation4]  }
  0x12   :  { %s276_s25 = scalar_lea.hbm %s360_s1, 256 }
  0x13   :  { %p277_p8 = scmp.ne.s32.totalorder %s360_s1, %s276_s25  ;;  %p280_p9 = scmp.lt.u32.totalorder %s276_s25, %s360_s1 }
  0x15   :  { %p282_p10 = pnand %p280_p9, %p277_p8 }
  0x17   :  { %285 = shalt.err (!%p282_p10)
}
  0x18   :  { %s286_s30 = scalar_lea.vmem %s34_s12, 256  ;;  %p291_p12 = scmp.lt.s32.totalorder %s34_s12, %s34_s12 }
  0x19   :  { %p287_p11 = scmp.ne.s32.totalorder %s34_s12, %s286_s30  ;;  %p292_p13 = scmp.lt.s32.totalorder %s286_s30, %s286_s30 }
  0x1b   :  { %p293_p0 = por %p292_p13, %p291_p12 }
  0x1d   :  { %p294_p1 = pnand %p293_p0, %p287_p11 }
  0x1f   :  { %297 = shalt.err (!%p294_p1)
}
  0x20   :  { %36 = dma.hbm_to_vmem [thread:$0]  %s360_s1, 256, %s34_s12, [#allocation6]  }
  0x21   :  { %298 = dma.done.wait [#allocation4], 256  }
  0x22   :  { %299 = vsyncadd [#allocation4], 4294967040 }
  0x23   :  { %300 = dma.done.wait [#allocation6], 256  }
  0x24   :  { %301 = vsyncadd [#allocation6], 4294967040  ;;  %v76_v0 = vlaneseq  ;;  %vm51_vm0 = vcmask 1024   ;;  %v304_v1 = vmov 1983009808   ;;  %v305_v3 = vmov 0.0  }
  0x25   :  { %v74_v2 = vunpack.c.l.s4 %v304_v1  ;;  %52 = vst.msk [vmem:[#allocation2] sm:$0x3] %vm51_vm0, %v305_v3  ;;  %v53_v6 = vld [vmem:[#allocation3] sm:$0xff]  ;;  %v54_v7 = vld [vmem:[#allocation3 + $0x8] sm:$0xff]  ;;  %v55_v8 = vld [vmem:[#allocation5] sm:$0xff]  ;;  %vm114_vm1 = vcmask 1041408  }
  0x26   :  { %v77_v5 = vshrl.u32 %v76_v0, 7  ;;  %v56_v9 = vld [vmem:[#allocation5 + $0x8] sm:$0xff]  ;;  %v57_v10 = vsub.f32 %v53_v6, %v55_v8 }
  0x27   :  { %v75_v4 = vunpack.c.0.s8 %v74_v2  ;;  %v58_v12 = vsub.f32 %v54_v7, %v56_v9 }
  0x28   :  { %v59_v13 = vmul.f32 %v57_v10, %v57_v10 }
  0x29   :  { %v78_v11 = vsub.s32 %v75_v4, %v77_v5  ;;  %v60_v14 = vmul.f32 %v58_v12, %v58_v12 }
  0x2a   :  { %v72_v15 = vcombine.high %v59_v13, %v59_v13 }
  0x2b   :  { %v79_v16 = vrot.slane %v59_v13, %v78_v11  ;;  %v89_v17 = vcombine.high %v60_v14, %v60_v14  ;;  %v96_v20 = vrot.slane %v60_v14, %v78_v11 }
  0x2c   :  { %v86_v18 = vrot.slane %v72_v15, %v78_v11  ;;  %v69_v40 = vld [vmem:[#allocation2] sm:$0x3] }
  0x2d   :  { %v87_v19 = vcombine.high %v79_v16, %v79_v16  ;;  %v115_v21 = vsel %vm114_vm1, %v79_v16, 0.0  ;;  %v103_v26 = vrot.slane %v89_v17, %v78_v11  ;;  %v104_v27 = vcombine.high %v96_v20, %v96_v20 }
  0x2e   :  { %v88_v22 = vcombine.high %v86_v18, %v86_v18  ;;  %v118_v24 = vsel %vm114_vm1, %v86_v18, 0.0  ;;  %v122_v30 = vsel %vm114_vm1, %v96_v20, 0.0 }
  0x2f   :  { %v116_v23 = vsel %vm114_vm1, %v87_v19, 0.0  ;;  %v105_v32 = vcombine.high %v103_v26, %v103_v26  ;;  %v124_v33 = vsel %vm114_vm1, %v104_v27, 0.0  ;;  %v126_v35 = vsel %vm114_vm1, %v103_v26, 0.0 }
  0x30   :  { %v117_v25 = vadd.f32 %v116_v23, %v115_v21  ;;  %v120_v28 = vsel %vm114_vm1, %v88_v22, 0.0 }
  0x31   :  { %v128_v37 = vsel %vm114_vm1, %v105_v32, 0.0 }
  0x32   :  { %v119_v29 = vadd.f32 %v118_v24, %v117_v25 }
  0x34   :  { %v121_v31 = vadd.f32 %v120_v28, %v119_v29 }
  0x36   :  { %v123_v34 = vadd.f32 %v122_v30, %v121_v31 }
  0x38   :  { %v125_v36 = vadd.f32 %v124_v33, %v123_v34 }
  0x3a   :  { %v127_v38 = vadd.f32 %v126_v35, %v125_v36 }
  0x3c   :  { %v129_v39 = vadd.f32 %v128_v37, %v127_v38 }
  0x3e   :  { %130 = vadd.xlane.f32.xlu0 %v129_v39 }
  0xcb   :  { %v131_v41 = vpop.xlane.xlu0 %130 }
  0xcc   :  { %v132_v42 = vadd.f32 %v131_v41, %v69_v40 }
  0xce   :  { %134 = vst.msk [vmem:[#allocation2] sm:$0x3] %vm51_vm0, %v132_v42 }
  0xd5   :  { %v241_v43 = vld [vmem:[#allocation2] sm:$0x3] }
  0xd6   :  { %243 = vst.msk [vmem:[%s361_s2] sm:$0x3] %vm51_vm0, %v241_v43 }
  0xd7   :  { %248 = vsyncpa [#allocation4], 1 }
  0xd8   :  { %249 = vsyncpa [#allocation6], 1 }

</bundles_post_ra>
